<compile_context>
chip_gen: v5e
topology: v5e:2x2
jax: 0.10.0
libtpu: 0.0.40
codegen_flags: <defaults>
</compile_context>

<pallas_src>
import functools
import math

import jax
import jax.numpy as jnp
from jax.experimental import pallas as pl
from jax.experimental.pallas import tpu as pltpu  # noqa: F401  (TPU backend)


# ----------------------------------------------------------------------------
# One fused Pallas kernel for the entire VAE forward pass.
# ----------------------------------------------------------------------------
def _vae_fused_kernel(*refs, n_enc, n_dec, C, max_mu, max_logvar, min_logvar):
    it = iter(refs)
    # ---- inputs ----
    x_ref = next(it)                                         # (B, G)
    eps_ref = next(it)                                       # (C, B, D)
    enc = [(next(it), next(it)) for _ in range(n_enc)]       # [(in,out), (1,out)]
    head_w_ref, head_b_ref = next(it), next(it)              # (H, C+2D), (1, C+2D)
    mu_wy_ref, lv_wy_ref = next(it), next(it)                # (C, D), (C, D)
    ymu_w_ref, ymu_b_ref = next(it), next(it)                # (C, D), (1, D)
    ylv_w_ref, ylv_b_ref = next(it), next(it)                # (C, D), (1, D)
    dec = [(next(it), next(it)) for _ in range(n_dec)]       # [(in,out), (1,out)]
    # ---- outputs ----
    (mus_ref, logvars_ref, zs_ref, logits_ref, prob_ref,
     ymu_ref, ylv_ref, rec_ref) = (next(it) for _ in range(8))

    D = mu_wy_ref.shape[1]

    # ---------- encoder trunk: h = relu(...relu(x W0 + b0)...) ----------
    h = x_ref[...]
    for w_ref, b_ref in enc:
        h = jnp.maximum(
            jnp.dot(h, w_ref[...], preferred_element_type=jnp.float32)
            + b_ref[...],
            0.0,
        )

    # ---------- fused q(y|x) / q(z|x,y) heads: one lane-wide matmul ----------
    head = (
        jnp.dot(h, head_w_ref[...], preferred_element_type=jnp.float32)
        + head_b_ref[...]
    )                                                        # (B, C + 2D)
    logits = head[:, :C]                                     # (B, C)
    mu_h = head[:, C:C + D]                                  # (B, D)
    lv_h = head[:, C + D:C + 2 * D]                          # (B, D)

    logits_ref[...] = logits
    m = jnp.max(logits, axis=-1, keepdims=True)
    e = jnp.exp(logits - m)
    prob_ref[...] = e / jnp.sum(e, axis=-1, keepdims=True)   # softmax in-kernel

    # ---------- p(z|y) priors: clip(W + b), no identity matmul ----------
    ymu_ref[...] = jnp.clip(ymu_w_ref[...] + ymu_b_ref[...], -max_mu, max_mu)
    ylv_ref[...] = jnp.clip(ylv_w_ref[...] + ylv_b_ref[...],
                            min_logvar, max_logvar)

    # Hoist weight loads out of the per-category loop.
    mu_wy = mu_wy_ref[...]                                   # (C, D)
    lv_wy = lv_wy_ref[...]                                   # (C, D)
    dec_w = [(w_ref[...], b_ref[...]) for w_ref, b_ref in dec]

    # ---------- per-category posterior, reparameterization, decoder ----------
    for c in range(C):
        mu_c = jnp.clip(mu_h + mu_wy[c:c + 1, :], -max_mu, max_mu)         # (B, D)
        lv_c = jnp.clip(lv_h + lv_wy[c:c + 1, :], min_logvar, max_logvar)  # (B, D)
        z_c = mu_c + jnp.exp(0.5 * lv_c) * eps_ref[c]                      # (B, D)

        mus_ref[c] = mu_c
        logvars_ref[c] = lv_c
        zs_ref[c] = z_c

        r = z_c
        for li, (w, b) in enumerate(dec_w):
            r = jnp.dot(r, w, preferred_element_type=jnp.float32) + b
            if li < n_dec - 1:
                r = jnp.maximum(r, 0.0)
        rec_ref[c] = r                                                     # (B, G)


# ----------------------------------------------------------------------------
# Deterministic parameter initialization (xavier_uniform weights, zero bias,
# mirroring VAE.weight_initialization()).  All tensors created in float32 once.
# ----------------------------------------------------------------------------
def _xavier_uniform(key, fan_in, fan_out):
    limit = (6.0 / (fan_in + fan_out)) ** 0.5
    return jax.random.uniform(key, (fan_in, fan_out), jnp.float32, -limit, limit)


def init_vae_params(key, cfg):
    enc_in, enc_out = cfg["encoder_in_channels"], cfg["encoder_out_channels"]
    dec_in, dec_out = cfg["decoder_in_channels"], cfg["decoder_out_channels"]
    C, D = cfg["y_dim"], cfg["latent_dim"]
    H = enc_out[-1]

    keys = iter(jax.random.split(key, len(enc_in) + len(dec_in) + 5))
    params = {}

    # Encoder dense blocks (block_type='Dense'): x -> hidden
    params["encoder_layers"] = [
        (_xavier_uniform(next(keys), i, o), jnp.zeros((1, o), jnp.float32))
        for i, o in zip(enc_in, enc_out)
    ]

    # Fused head weight: [W_logits | W_mu(h-part) | W_logvar(h-part)].
    # mu/logvar are initialized as a single (H+C, D) Linear (as in the module)
    # and split into the h-part (H, D) and the one-hot part (C, D).
    w_logits = _xavier_uniform(next(keys), H, C)
    w_mu_full = _xavier_uniform(next(keys), H + C, D)
    w_lv_full = _xavier_uniform(next(keys), H + C, D)
    params["head_w"] = jnp.concatenate(
        [w_logits, w_mu_full[:H], w_lv_full[:H]], axis=1)      # (H, C + 2D)
    params["head_b"] = jnp.zeros((1, C + 2 * D), jnp.float32)
    params["mu_wy"] = w_mu_full[H:]                            # (C, D)
    params["logvar_wy"] = w_lv_full[H:]                        # (C, D)

    # p(z|y): category -> (y_mu, y_logvar); one-hot input => rows of W + b.
    params["y_mu_w"] = _xavier_uniform(next(keys), C, D)
    params["y_mu_b"] = jnp.zeros((1, D), jnp.float32)
    params["y_logvar_w"] = _xavier_uniform(next(keys), C, D)
    params["y_logvar_b"] = jnp.zeros((1, D), jnp.float32)

    # p(x|z): decoder dense blocks
    params["decoder_layers"] = [
        (_xavier_uniform(next(keys), i, o), jnp.zeros((1, o), jnp.float32))
        for i, o in zip(dec_in, dec_out)
    ]
    return params


# ----------------------------------------------------------------------------
# VAE forward: one fused pallas_call producing the full output dict.
# ----------------------------------------------------------------------------
def vae_forward(params, x, eps, cfg, neighbor_x=None):
    del neighbor_x  # Dense config: neighbor graph path unused.
    B, G = x.shape
    C, D = cfg["y_dim"], cfg["latent_dim"]
    n_enc = len(params["encoder_layers"])
    n_dec = len(params["decoder_layers"])

    flat_inputs = [x, eps]
    for w, b in params["encoder_layers"]:
        flat_inputs += [w, b]
    flat_inputs += [
        params["head_w"], params["head_b"],
        params["mu_wy"], params["logvar_wy"],
        params["y_mu_w"], params["y_mu_b"],
        params["y_logvar_w"], params["y_logvar_b"],
    ]
    for w, b in params["decoder_layers"]:
        flat_inputs += [w, b]

    out_shapes = (
        jax.ShapeDtypeStruct((C, B, D), jnp.float32),  # means
        jax.ShapeDtypeStruct((C, B, D), jnp.float32),  # logvars
        jax.ShapeDtypeStruct((C, B, D), jnp.float32),  # gaussians (zs)
        jax.ShapeDtypeStruct((B, C), jnp.float32),     # logits
        jax.ShapeDtypeStruct((B, C), jnp.float32),     # prob_cat
        jax.ShapeDtypeStruct((C, D), jnp.float32),     # y_means
        jax.ShapeDtypeStruct((C, D), jnp.float32),     # y_logvars
        jax.ShapeDtypeStruct((C, B, G), jnp.float32),  # reconstructed
    )

    # Advisory cost hint for XLA scheduling around the fused custom call.
    flops = 0
    for w, _ in params["encoder_layers"]:
        flops += 2 * B * w.shape[0] * w.shape[1]
    flops += 2 * B * params["head_w"].shape[0] * params["head_w"].shape[1]
    for w, _ in params["decoder_layers"]:
        flops += 2 * C * B * w.shape[0] * w.shape[1]
    transcendentals = B * C + C * B * D        # softmax exp + reparam exp
    bytes_accessed = (
        sum(int(a.size) * a.dtype.itemsize for a in flat_inputs)
        + sum(4 * math.prod(s.shape) for s in out_shapes)
    )

    kernel = functools.partial(
        _vae_fused_kernel,
        n_enc=n_enc, n_dec=n_dec, C=C,
        max_mu=cfg["max_mu"],
        max_logvar=cfg["max_logvar"],
        min_logvar=cfg["min_logvar"],
    )

    (mus, logvars, zs, logits, prob_cat,
     y_mus, y_logvars, reconstructed) = pl.pallas_call(
        kernel,
        out_shape=out_shapes,
        cost_estimate=pl.CostEstimate(
            flops=flops,
            transcendentals=transcendentals,
            bytes_accessed=bytes_accessed,
        ),
    )(*flat_inputs)

    # GMM_model_name == 'VVI' -> no EEE reshaping branch.
    return {
        "means": mus,
        "logvars": logvars,
        "gaussians": zs,
        "logits": logits,
        "prob_cat": prob_cat,
        "y_means": y_mus,
        "y_logvars": y_logvars,
        "y_var_invs": None,
        "reconstructed": reconstructed,
    }


# ----------------------------------------------------------------------------
if __name__ == "__main__":
    cfg = dict(
        encoder_in_channels=[32, 32],
        encoder_out_channels=[32, 32],
        decoder_in_channels=[16, 32],
        decoder_out_channels=[32, 32],   # final output dim == encoder_in_channels[0]
        y_dim=4,
        latent_dim=16,
        max_mu=10.0,
        max_logvar=5.0,
        min_logvar=-5.0,
    )

    key = jax.random.PRNGKey(0)
    k_param, k_x, k_eps = jax.random.split(key, 3)

    B, G = 8, cfg["encoder_in_channels"][0]
    x = jax.random.normal(k_x, (B, G), jnp.float32)
    eps = jax.random.normal(k_eps, (cfg["y_dim"], B, cfg["latent_dim"]), jnp.float32)

    params = init_vae_params(k_param, cfg)

    fwd = jax.jit(lambda p, xx, ee: vae_forward(p, xx, ee, cfg))
    out = fwd(params, x, eps)

    for v in jax.tree_util.tree_leaves(out):
        jax.block_until_ready(v)

    assert out["means"].shape == (cfg["y_dim"], B, cfg["latent_dim"])
    assert out["logvars"].shape == (cfg["y_dim"], B, cfg["latent_dim"])
    assert out["gaussians"].shape == (cfg["y_dim"], B, cfg["latent_dim"])
    assert out["logits"].shape == (B, cfg["y_dim"])
    assert out["prob_cat"].shape == (B, cfg["y_dim"])
    assert out["y_means"].shape == (cfg["y_dim"], cfg["latent_dim"])
    assert out["y_logvars"].shape == (cfg["y_dim"], cfg["latent_dim"])
    assert out["reconstructed"].shape == (cfg["y_dim"], B, G)
    assert out["y_var_invs"] is None

    print("KERNEL_OK")
</pallas_src>

<mosaic_0001>
module attributes {stable_mosaic.version = 11 : i64} {
  func.func @_vae_fused_kernel(%arg0: memref<8x32xf32, #tpu.memory_space<vmem>>, %arg1: memref<4x8x16xf32, #tpu.memory_space<vmem>>, %arg2: memref<32x32xf32, #tpu.memory_space<vmem>>, %arg3: memref<1x32xf32, #tpu.memory_space<vmem>>, %arg4: memref<32x32xf32, #tpu.memory_space<vmem>>, %arg5: memref<1x32xf32, #tpu.memory_space<vmem>>, %arg6: memref<32x36xf32, #tpu.memory_space<vmem>>, %arg7: memref<1x36xf32, #tpu.memory_space<vmem>>, %arg8: memref<4x16xf32, #tpu.memory_space<vmem>>, %arg9: memref<4x16xf32, #tpu.memory_space<vmem>>, %arg10: memref<4x16xf32, #tpu.memory_space<vmem>>, %arg11: memref<1x16xf32, #tpu.memory_space<vmem>>, %arg12: memref<4x16xf32, #tpu.memory_space<vmem>>, %arg13: memref<1x16xf32, #tpu.memory_space<vmem>>, %arg14: memref<16x32xf32, #tpu.memory_space<vmem>>, %arg15: memref<1x32xf32, #tpu.memory_space<vmem>>, %arg16: memref<32x32xf32, #tpu.memory_space<vmem>>, %arg17: memref<1x32xf32, #tpu.memory_space<vmem>>, %arg18: memref<4x8x16xf32, #tpu.memory_space<vmem>>, %arg19: memref<4x8x16xf32, #tpu.memory_space<vmem>>, %arg20: memref<4x8x16xf32, #tpu.memory_space<vmem>>, %arg21: memref<8x4xf32, #tpu.memory_space<vmem>>, %arg22: memref<8x4xf32, #tpu.memory_space<vmem>>, %arg23: memref<4x16xf32, #tpu.memory_space<vmem>>, %arg24: memref<4x16xf32, #tpu.memory_space<vmem>>, %arg25: memref<4x8x32xf32, #tpu.memory_space<vmem>>) attributes {dimension_semantics = [], scalar_prefetch = 0 : i64, scratch_operands = 0 : i64, tpu.core_type = #tpu.core_type<tc>} {
    %c0 = arith.constant 0 : index
    %c0_0 = arith.constant 0 : index
    %0 = vector.load %arg0[%c0, %c0_0] : memref<8x32xf32, #tpu.memory_space<vmem>>, vector<8x32xf32>
    %c0_1 = arith.constant 0 : index
    %c0_2 = arith.constant 0 : index
    %1 = vector.load %arg2[%c0_1, %c0_2] : memref<32x32xf32, #tpu.memory_space<vmem>>, vector<32x32xf32>
    %cst = arith.constant dense<0.000000e+00> : vector<8x32xf32>
    %2 = tpu.matmul %0, %1, %cst {dimension_numbers = #tpu.dot_dimension_numbers<[1], [0], [0], [1], [0, 0, 1, 1], [], []>} : vector<8x32xf32>, vector<32x32xf32>, vector<8x32xf32> -> vector<8x32xf32>
    %c0_3 = arith.constant 0 : index
    %c0_4 = arith.constant 0 : index
    %3 = vector.load %arg3[%c0_3, %c0_4] : memref<1x32xf32, #tpu.memory_space<vmem>>, vector<1x32xf32>
    %4 = vector.broadcast %3 : vector<1x32xf32> to vector<8x32xf32>
    %5 = arith.addf %2, %4 : vector<8x32xf32>
    %cst_5 = arith.constant 0.000000e+00 : f32
    %6 = vector.broadcast %cst_5 : f32 to vector<8x32xf32>
    %7 = arith.maximumf %5, %6 : vector<8x32xf32>
    %c0_6 = arith.constant 0 : index
    %c0_7 = arith.constant 0 : index
    %8 = vector.load %arg4[%c0_6, %c0_7] : memref<32x32xf32, #tpu.memory_space<vmem>>, vector<32x32xf32>
    %cst_8 = arith.constant dense<0.000000e+00> : vector<8x32xf32>
    %9 = tpu.matmul %7, %8, %cst_8 {dimension_numbers = #tpu.dot_dimension_numbers<[1], [0], [0], [1], [0, 0, 1, 1], [], []>} : vector<8x32xf32>, vector<32x32xf32>, vector<8x32xf32> -> vector<8x32xf32>
    %c0_9 = arith.constant 0 : index
    %c0_10 = arith.constant 0 : index
    %10 = vector.load %arg5[%c0_9, %c0_10] : memref<1x32xf32, #tpu.memory_space<vmem>>, vector<1x32xf32>
    %11 = vector.broadcast %10 : vector<1x32xf32> to vector<8x32xf32>
    %12 = arith.addf %9, %11 : vector<8x32xf32>
    %cst_11 = arith.constant 0.000000e+00 : f32
    %13 = vector.broadcast %cst_11 : f32 to vector<8x32xf32>
    %14 = arith.maximumf %12, %13 : vector<8x32xf32>
    %c0_12 = arith.constant 0 : index
    %c0_13 = arith.constant 0 : index
    %15 = vector.load %arg6[%c0_12, %c0_13] : memref<32x36xf32, #tpu.memory_space<vmem>>, vector<32x36xf32>
    %cst_14 = arith.constant dense<0.000000e+00> : vector<8x36xf32>
    %16 = tpu.matmul %14, %15, %cst_14 {dimension_numbers = #tpu.dot_dimension_numbers<[1], [0], [0], [1], [0, 0, 1, 1], [], []>} : vector<8x32xf32>, vector<32x36xf32>, vector<8x36xf32> -> vector<8x36xf32>
    %c0_15 = arith.constant 0 : index
    %c0_16 = arith.constant 0 : index
    %17 = vector.load %arg7[%c0_15, %c0_16] : memref<1x36xf32, #tpu.memory_space<vmem>>, vector<1x36xf32>
    %18 = vector.broadcast %17 : vector<1x36xf32> to vector<8x36xf32>
    %19 = arith.addf %16, %18 : vector<8x36xf32>
    %20 = vector.extract_strided_slice %19 {offsets = [0, 0], sizes = [8, 4], strides = [1, 1]} : vector<8x36xf32> to vector<8x4xf32>
    %21 = vector.extract_strided_slice %19 {offsets = [0, 4], sizes = [8, 16], strides = [1, 1]} : vector<8x36xf32> to vector<8x16xf32>
    %22 = vector.extract_strided_slice %19 {offsets = [0, 20], sizes = [8, 16], strides = [1, 1]} : vector<8x36xf32> to vector<8x16xf32>
    %c0_17 = arith.constant 0 : index
    %c0_18 = arith.constant 0 : index
    %23 = vector.load %arg21[%c0_17, %c0_18] : memref<8x4xf32, #tpu.memory_space<vmem>>, vector<8x4xf32>
    tpu.vector_store %arg21[%c0_17, %c0_18], %20 {strides = array<i32>} : memref<8x4xf32, #tpu.memory_space<vmem>>, vector<8x4xf32>,
    %cst_19 = arith.constant dense<0xFF800000> : vector<8xf32>
    %24 = vector.multi_reduction <maximumf>, %20, %cst_19 [1] : vector<8x4xf32> to vector<8xf32>
    %25 = vector.shape_cast %24 : vector<8xf32> to vector<8x1xf32>
    %26 = vector.broadcast %25 : vector<8x1xf32> to vector<8x4xf32>
    %27 = arith.subf %20, %26 : vector<8x4xf32>
    %28 = math.exp %27 : vector<8x4xf32>
    %cst_20 = arith.constant dense<0.000000e+00> : vector<8xf32>
    %29 = vector.multi_reduction <add>, %28, %cst_20 [1] : vector<8x4xf32> to vector<8xf32>
    %30 = vector.shape_cast %29 : vector<8xf32> to vector<8x1xf32>
    %31 = vector.broadcast %30 : vector<8x1xf32> to vector<8x4xf32>
    %32 = arith.divf %28, %31 : vector<8x4xf32>
    %c0_21 = arith.constant 0 : index
    %c0_22 = arith.constant 0 : index
    %33 = vector.load %arg22[%c0_21, %c0_22] : memref<8x4xf32, #tpu.memory_space<vmem>>, vector<8x4xf32>
    tpu.vector_store %arg22[%c0_21, %c0_22], %32 {strides = array<i32>} : memref<8x4xf32, #tpu.memory_space<vmem>>, vector<8x4xf32>,
    %c0_23 = arith.constant 0 : index
    %c0_24 = arith.constant 0 : index
    %34 = vector.load %arg10[%c0_23, %c0_24] : memref<4x16xf32, #tpu.memory_space<vmem>>, vector<4x16xf32>
    %c0_25 = arith.constant 0 : index
    %c0_26 = arith.constant 0 : index
    %35 = vector.load %arg11[%c0_25, %c0_26] : memref<1x16xf32, #tpu.memory_space<vmem>>, vector<1x16xf32>
    %36 = vector.broadcast %35 : vector<1x16xf32> to vector<4x16xf32>
    %37 = arith.addf %34, %36 : vector<4x16xf32>
    %cst_27 = arith.constant -1.000000e+01 : f32
    %cst_28 = arith.constant 1.000000e+01 : f32
    %38 = vector.broadcast %cst_27 : f32 to vector<4x16xf32>
    %39 = arith.maximumf %38, %37 : vector<4x16xf32>
    %40 = vector.broadcast %cst_28 : f32 to vector<4x16xf32>
    %41 = arith.minimumf %40, %39 : vector<4x16xf32>
    %c0_29 = arith.constant 0 : index
    %c0_30 = arith.constant 0 : index
    %42 = vector.load %arg23[%c0_29, %c0_30] : memref<4x16xf32, #tpu.memory_space<vmem>>, vector<4x16xf32>
    tpu.vector_store %arg23[%c0_29, %c0_30], %41 {strides = array<i32>} : memref<4x16xf32, #tpu.memory_space<vmem>>, vector<4x16xf32>,
    %c0_31 = arith.constant 0 : index
    %c0_32 = arith.constant 0 : index
    %43 = vector.load %arg12[%c0_31, %c0_32] : memref<4x16xf32, #tpu.memory_space<vmem>>, vector<4x16xf32>
    %c0_33 = arith.constant 0 : index
    %c0_34 = arith.constant 0 : index
    %44 = vector.load %arg13[%c0_33, %c0_34] : memref<1x16xf32, #tpu.memory_space<vmem>>, vector<1x16xf32>
    %45 = vector.broadcast %44 : vector<1x16xf32> to vector<4x16xf32>
    %46 = arith.addf %43, %45 : vector<4x16xf32>
    %cst_35 = arith.constant -5.000000e+00 : f32
    %cst_36 = arith.constant 5.000000e+00 : f32
    %47 = vector.broadcast %cst_35 : f32 to vector<4x16xf32>
    %48 = arith.maximumf %47, %46 : vector<4x16xf32>
    %49 = vector.broadcast %cst_36 : f32 to vector<4x16xf32>
    %50 = arith.minimumf %49, %48 : vector<4x16xf32>
    %c0_37 = arith.constant 0 : index
    %c0_38 = arith.constant 0 : index
    %51 = vector.load %arg24[%c0_37, %c0_38] : memref<4x16xf32, #tpu.memory_space<vmem>>, vector<4x16xf32>
    tpu.vector_store %arg24[%c0_37, %c0_38], %50 {strides = array<i32>} : memref<4x16xf32, #tpu.memory_space<vmem>>, vector<4x16xf32>,
    %c0_39 = arith.constant 0 : index
    %c0_40 = arith.constant 0 : index
    %52 = vector.load %arg8[%c0_39, %c0_40] : memref<4x16xf32, #tpu.memory_space<vmem>>, vector<4x16xf32>
    %c0_41 = arith.constant 0 : index
    %c0_42 = arith.constant 0 : index
    %53 = vector.load %arg9[%c0_41, %c0_42] : memref<4x16xf32, #tpu.memory_space<vmem>>, vector<4x16xf32>
    %c0_43 = arith.constant 0 : index
    %c0_44 = arith.constant 0 : index
    %54 = vector.load %arg14[%c0_43, %c0_44] : memref<16x32xf32, #tpu.memory_space<vmem>>, vector<16x32xf32>
    %c0_45 = arith.constant 0 : index
    %c0_46 = arith.constant 0 : index
    %55 = vector.load %arg15[%c0_45, %c0_46] : memref<1x32xf32, #tpu.memory_space<vmem>>, vector<1x32xf32>
    %c0_47 = arith.constant 0 : index
    %c0_48 = arith.constant 0 : index
    %56 = vector.load %arg16[%c0_47, %c0_48] : memref<32x32xf32, #tpu.memory_space<vmem>>, vector<32x32xf32>
    %c0_49 = arith.constant 0 : index
    %c0_50 = arith.constant 0 : index
    %57 = vector.load %arg17[%c0_49, %c0_50] : memref<1x32xf32, #tpu.memory_space<vmem>>, vector<1x32xf32>
    %58 = vector.extract_strided_slice %52 {offsets = [0, 0], sizes = [1, 16], strides = [1, 1]} : vector<4x16xf32> to vector<1x16xf32>
    %59 = vector.broadcast %58 : vector<1x16xf32> to vector<8x16xf32>
    %60 = arith.addf %21, %59 : vector<8x16xf32>
    %cst_51 = arith.constant -1.000000e+01 : f32
    %cst_52 = arith.constant 1.000000e+01 : f32
    %61 = vector.broadcast %cst_51 : f32 to vector<8x16xf32>
    %62 = arith.maximumf %61, %60 : vector<8x16xf32>
    %63 = vector.broadcast %cst_52 : f32 to vector<8x16xf32>
    %64 = arith.minimumf %63, %62 : vector<8x16xf32>
    %65 = vector.extract_strided_slice %53 {offsets = [0, 0], sizes = [1, 16], strides = [1, 1]} : vector<4x16xf32> to vector<1x16xf32>
    %66 = vector.broadcast %65 : vector<1x16xf32> to vector<8x16xf32>
    %67 = arith.addf %22, %66 : vector<8x16xf32>
    %cst_53 = arith.constant -5.000000e+00 : f32
    %cst_54 = arith.constant 5.000000e+00 : f32
    %68 = vector.broadcast %cst_53 : f32 to vector<8x16xf32>
    %69 = arith.maximumf %68, %67 : vector<8x16xf32>
    %70 = vector.broadcast %cst_54 : f32 to vector<8x16xf32>
    %71 = arith.minimumf %70, %69 : vector<8x16xf32>
    %cst_55 = arith.constant 5.000000e-01 : f32
    %72 = vector.broadcast %cst_55 : f32 to vector<8x16xf32>
    %73 = arith.mulf %72, %71 : vector<8x16xf32>
    %74 = math.exp %73 : vector<8x16xf32>
    %c0_56 = arith.constant 0 : index
    %c0_57 = arith.constant 0 : index
    %c0_58 = arith.constant 0 : index
    %75 = vector.load %arg1[%c0_56, %c0_57, %c0_58] : memref<4x8x16xf32, #tpu.memory_space<vmem>>, vector<1x8x16xf32>
    %76 = vector.shape_cast %75 : vector<1x8x16xf32> to vector<8x16xf32>
    %77 = arith.mulf %74, %76 : vector<8x16xf32>
    %78 = arith.addf %64, %77 : vector<8x16xf32>
    %c0_59 = arith.constant 0 : index
    %c0_60 = arith.constant 0 : index
    %c0_61 = arith.constant 0 : index
    %79 = vector.load %arg18[%c0_59, %c0_60, %c0_61] : memref<4x8x16xf32, #tpu.memory_space<vmem>>, vector<1x8x16xf32>
    %80 = vector.shape_cast %79 : vector<1x8x16xf32> to vector<8x16xf32>
    %81 = vector.shape_cast %64 : vector<8x16xf32> to vector<1x8x16xf32>
    tpu.vector_store %arg18[%c0_59, %c0_60, %c0_61], %81 {strides = array<i32>} : memref<4x8x16xf32, #tpu.memory_space<vmem>>, vector<1x8x16xf32>,
    %c0_62 = arith.constant 0 : index
    %c0_63 = arith.constant 0 : index
    %c0_64 = arith.constant 0 : index
    %82 = vector.load %arg19[%c0_62, %c0_63, %c0_64] : memref<4x8x16xf32, #tpu.memory_space<vmem>>, vector<1x8x16xf32>
    %83 = vector.shape_cast %82 : vector<1x8x16xf32> to vector<8x16xf32>
    %84 = vector.shape_cast %71 : vector<8x16xf32> to vector<1x8x16xf32>
    tpu.vector_store %arg19[%c0_62, %c0_63, %c0_64], %84 {strides = array<i32>} : memref<4x8x16xf32, #tpu.memory_space<vmem>>, vector<1x8x16xf32>,
    %c0_65 = arith.constant 0 : index
    %c0_66 = arith.constant 0 : index
    %c0_67 = arith.constant 0 : index
    %85 = vector.load %arg20[%c0_65, %c0_66, %c0_67] : memref<4x8x16xf32, #tpu.memory_space<vmem>>, vector<1x8x16xf32>
    %86 = vector.shape_cast %85 : vector<1x8x16xf32> to vector<8x16xf32>
    %87 = vector.shape_cast %78 : vector<8x16xf32> to vector<1x8x16xf32>
    tpu.vector_store %arg20[%c0_65, %c0_66, %c0_67], %87 {strides = array<i32>} : memref<4x8x16xf32, #tpu.memory_space<vmem>>, vector<1x8x16xf32>,
    %cst_68 = arith.constant dense<0.000000e+00> : vector<8x32xf32>
    %88 = tpu.matmul %78, %54, %cst_68 {dimension_numbers = #tpu.dot_dimension_numbers<[1], [0], [0], [1], [0, 0, 1, 1], [], []>} : vector<8x16xf32>, vector<16x32xf32>, vector<8x32xf32> -> vector<8x32xf32>
    %89 = vector.broadcast %55 : vector<1x32xf32> to vector<8x32xf32>
    %90 = arith.addf %88, %89 : vector<8x32xf32>
    %cst_69 = arith.constant 0.000000e+00 : f32
    %91 = vector.broadcast %cst_69 : f32 to vector<8x32xf32>
    %92 = arith.maximumf %90, %91 : vector<8x32xf32>
    %cst_70 = arith.constant dense<0.000000e+00> : vector<8x32xf32>
    %93 = tpu.matmul %92, %56, %cst_70 {dimension_numbers = #tpu.dot_dimension_numbers<[1], [0], [0], [1], [0, 0, 1, 1], [], []>} : vector<8x32xf32>, vector<32x32xf32>, vector<8x32xf32> -> vector<8x32xf32>
    %94 = vector.broadcast %57 : vector<1x32xf32> to vector<8x32xf32>
    %95 = arith.addf %93, %94 : vector<8x32xf32>
    %c0_71 = arith.constant 0 : index
    %c0_72 = arith.constant 0 : index
    %c0_73 = arith.constant 0 : index
    %96 = vector.load %arg25[%c0_71, %c0_72, %c0_73] : memref<4x8x32xf32, #tpu.memory_space<vmem>>, vector<1x8x32xf32>
    %97 = vector.shape_cast %96 : vector<1x8x32xf32> to vector<8x32xf32>
    %98 = vector.shape_cast %95 : vector<8x32xf32> to vector<1x8x32xf32>
    tpu.vector_store %arg25[%c0_71, %c0_72, %c0_73], %98 {strides = array<i32>} : memref<4x8x32xf32, #tpu.memory_space<vmem>>, vector<1x8x32xf32>,
    %99 = vector.extract_strided_slice %52 {offsets = [1, 0], sizes = [1, 16], strides = [1, 1]} : vector<4x16xf32> to vector<1x16xf32>
    %100 = vector.broadcast %99 : vector<1x16xf32> to vector<8x16xf32>
    %101 = arith.addf %21, %100 : vector<8x16xf32>
    %cst_74 = arith.constant -1.000000e+01 : f32
    %cst_75 = arith.constant 1.000000e+01 : f32
    %102 = vector.broadcast %cst_74 : f32 to vector<8x16xf32>
    %103 = arith.maximumf %102, %101 : vector<8x16xf32>
    %104 = vector.broadcast %cst_75 : f32 to vector<8x16xf32>
    %105 = arith.minimumf %104, %103 : vector<8x16xf32>
    %106 = vector.extract_strided_slice %53 {offsets = [1, 0], sizes = [1, 16], strides = [1, 1]} : vector<4x16xf32> to vector<1x16xf32>
    %107 = vector.broadcast %106 : vector<1x16xf32> to vector<8x16xf32>
    %108 = arith.addf %22, %107 : vector<8x16xf32>
    %cst_76 = arith.constant -5.000000e+00 : f32
    %cst_77 = arith.constant 5.000000e+00 : f32
    %109 = vector.broadcast %cst_76 : f32 to vector<8x16xf32>
    %110 = arith.maximumf %109, %108 : vector<8x16xf32>
    %111 = vector.broadcast %cst_77 : f32 to vector<8x16xf32>
    %112 = arith.minimumf %111, %110 : vector<8x16xf32>
    %cst_78 = arith.constant 5.000000e-01 : f32
    %113 = vector.broadcast %cst_78 : f32 to vector<8x16xf32>
    %114 = arith.mulf %113, %112 : vector<8x16xf32>
    %115 = math.exp %114 : vector<8x16xf32>
    %c1 = arith.constant 1 : index
    %c0_79 = arith.constant 0 : index
    %c0_80 = arith.constant 0 : index
    %116 = vector.load %arg1[%c1, %c0_79, %c0_80] : memref<4x8x16xf32, #tpu.memory_space<vmem>>, vector<1x8x16xf32>
    %117 = vector.shape_cast %116 : vector<1x8x16xf32> to vector<8x16xf32>
    %118 = arith.mulf %115, %117 : vector<8x16xf32>
    %119 = arith.addf %105, %118 : vector<8x16xf32>
    %c1_81 = arith.constant 1 : index
    %c0_82 = arith.constant 0 : index
    %c0_83 = arith.constant 0 : index
    %120 = vector.load %arg18[%c1_81, %c0_82, %c0_83] : memref<4x8x16xf32, #tpu.memory_space<vmem>>, vector<1x8x16xf32>
    %121 = vector.shape_cast %120 : vector<1x8x16xf32> to vector<8x16xf32>
    %122 = vector.shape_cast %105 : vector<8x16xf32> to vector<1x8x16xf32>
    tpu.vector_store %arg18[%c1_81, %c0_82, %c0_83], %122 {strides = array<i32>} : memref<4x8x16xf32, #tpu.memory_space<vmem>>, vector<1x8x16xf32>,
    %c1_84 = arith.constant 1 : index
    %c0_85 = arith.constant 0 : index
    %c0_86 = arith.constant 0 : index
    %123 = vector.load %arg19[%c1_84, %c0_85, %c0_86] : memref<4x8x16xf32, #tpu.memory_space<vmem>>, vector<1x8x16xf32>
    %124 = vector.shape_cast %123 : vector<1x8x16xf32> to vector<8x16xf32>
    %125 = vector.shape_cast %112 : vector<8x16xf32> to vector<1x8x16xf32>
    tpu.vector_store %arg19[%c1_84, %c0_85, %c0_86], %125 {strides = array<i32>} : memref<4x8x16xf32, #tpu.memory_space<vmem>>, vector<1x8x16xf32>,
    %c1_87 = arith.constant 1 : index
    %c0_88 = arith.constant 0 : index
    %c0_89 = arith.constant 0 : index
    %126 = vector.load %arg20[%c1_87, %c0_88, %c0_89] : memref<4x8x16xf32, #tpu.memory_space<vmem>>, vector<1x8x16xf32>
    %127 = vector.shape_cast %126 : vector<1x8x16xf32> to vector<8x16xf32>
    %128 = vector.shape_cast %119 : vector<8x16xf32> to vector<1x8x16xf32>
    tpu.vector_store %arg20[%c1_87, %c0_88, %c0_89], %128 {strides = array<i32>} : memref<4x8x16xf32, #tpu.memory_space<vmem>>, vector<1x8x16xf32>,
    %cst_90 = arith.constant dense<0.000000e+00> : vector<8x32xf32>
    %129 = tpu.matmul %119, %54, %cst_90 {dimension_numbers = #tpu.dot_dimension_numbers<[1], [0], [0], [1], [0, 0, 1, 1], [], []>} : vector<8x16xf32>, vector<16x32xf32>, vector<8x32xf32> -> vector<8x32xf32>
    %130 = vector.broadcast %55 : vector<1x32xf32> to vector<8x32xf32>
    %131 = arith.addf %129, %130 : vector<8x32xf32>
    %cst_91 = arith.constant 0.000000e+00 : f32
    %132 = vector.broadcast %cst_91 : f32 to vector<8x32xf32>
    %133 = arith.maximumf %131, %132 : vector<8x32xf32>
    %cst_92 = arith.constant dense<0.000000e+00> : vector<8x32xf32>
    %134 = tpu.matmul %133, %56, %cst_92 {dimension_numbers = #tpu.dot_dimension_numbers<[1], [0], [0], [1], [0, 0, 1, 1], [], []>} : vector<8x32xf32>, vector<32x32xf32>, vector<8x32xf32> -> vector<8x32xf32>
    %135 = vector.broadcast %57 : vector<1x32xf32> to vector<8x32xf32>
    %136 = arith.addf %134, %135 : vector<8x32xf32>
    %c1_93 = arith.constant 1 : index
    %c0_94 = arith.constant 0 : index
    %c0_95 = arith.constant 0 : index
    %137 = vector.load %arg25[%c1_93, %c0_94, %c0_95] : memref<4x8x32xf32, #tpu.memory_space<vmem>>, vector<1x8x32xf32>
    %138 = vector.shape_cast %137 : vector<1x8x32xf32> to vector<8x32xf32>
    %139 = vector.shape_cast %136 : vector<8x32xf32> to vector<1x8x32xf32>
    tpu.vector_store %arg25[%c1_93, %c0_94, %c0_95], %139 {strides = array<i32>} : memref<4x8x32xf32, #tpu.memory_space<vmem>>, vector<1x8x32xf32>,
    %140 = vector.extract_strided_slice %52 {offsets = [2, 0], sizes = [1, 16], strides = [1, 1]} : vector<4x16xf32> to vector<1x16xf32>
    %141 = vector.broadcast %140 : vector<1x16xf32> to vector<8x16xf32>
    %142 = arith.addf %21, %141 : vector<8x16xf32>
    %cst_96 = arith.constant -1.000000e+01 : f32
    %cst_97 = arith.constant 1.000000e+01 : f32
    %143 = vector.broadcast %cst_96 : f32 to vector<8x16xf32>
    %144 = arith.maximumf %143, %142 : vector<8x16xf32>
    %145 = vector.broadcast %cst_97 : f32 to vector<8x16xf32>
    %146 = arith.minimumf %145, %144 : vector<8x16xf32>
    %147 = vector.extract_strided_slice %53 {offsets = [2, 0], sizes = [1, 16], strides = [1, 1]} : vector<4x16xf32> to vector<1x16xf32>
    %148 = vector.broadcast %147 : vector<1x16xf32> to vector<8x16xf32>
    %149 = arith.addf %22, %148 : vector<8x16xf32>
    %cst_98 = arith.constant -5.000000e+00 : f32
    %cst_99 = arith.constant 5.000000e+00 : f32
    %150 = vector.broadcast %cst_98 : f32 to vector<8x16xf32>
    %151 = arith.maximumf %150, %149 : vector<8x16xf32>
    %152 = vector.broadcast %cst_99 : f32 to vector<8x16xf32>
    %153 = arith.minimumf %152, %151 : vector<8x16xf32>
    %cst_100 = arith.constant 5.000000e-01 : f32
    %154 = vector.broadcast %cst_100 : f32 to vector<8x16xf32>
    %155 = arith.mulf %154, %153 : vector<8x16xf32>
    %156 = math.exp %155 : vector<8x16xf32>
    %c2 = arith.constant 2 : index
    %c0_101 = arith.constant 0 : index
    %c0_102 = arith.constant 0 : index
    %157 = vector.load %arg1[%c2, %c0_101, %c0_102] : memref<4x8x16xf32, #tpu.memory_space<vmem>>, vector<1x8x16xf32>
    %158 = vector.shape_cast %157 : vector<1x8x16xf32> to vector<8x16xf32>
    %159 = arith.mulf %156, %158 : vector<8x16xf32>
    %160 = arith.addf %146, %159 : vector<8x16xf32>
    %c2_103 = arith.constant 2 : index
    %c0_104 = arith.constant 0 : index
    %c0_105 = arith.constant 0 : index
    %161 = vector.load %arg18[%c2_103, %c0_104, %c0_105] : memref<4x8x16xf32, #tpu.memory_space<vmem>>, vector<1x8x16xf32>
    %162 = vector.shape_cast %161 : vector<1x8x16xf32> to vector<8x16xf32>
    %163 = vector.shape_cast %146 : vector<8x16xf32> to vector<1x8x16xf32>
    tpu.vector_store %arg18[%c2_103, %c0_104, %c0_105], %163 {strides = array<i32>} : memref<4x8x16xf32, #tpu.memory_space<vmem>>, vector<1x8x16xf32>,
    %c2_106 = arith.constant 2 : index
    %c0_107 = arith.constant 0 : index
    %c0_108 = arith.constant 0 : index
    %164 = vector.load %arg19[%c2_106, %c0_107, %c0_108] : memref<4x8x16xf32, #tpu.memory_space<vmem>>, vector<1x8x16xf32>
    %165 = vector.shape_cast %164 : vector<1x8x16xf32> to vector<8x16xf32>
    %166 = vector.shape_cast %153 : vector<8x16xf32> to vector<1x8x16xf32>
    tpu.vector_store %arg19[%c2_106, %c0_107, %c0_108], %166 {strides = array<i32>} : memref<4x8x16xf32, #tpu.memory_space<vmem>>, vector<1x8x16xf32>,
    %c2_109 = arith.constant 2 : index
    %c0_110 = arith.constant 0 : index
    %c0_111 = arith.constant 0 : index
    %167 = vector.load %arg20[%c2_109, %c0_110, %c0_111] : memref<4x8x16xf32, #tpu.memory_space<vmem>>, vector<1x8x16xf32>
    %168 = vector.shape_cast %167 : vector<1x8x16xf32> to vector<8x16xf32>
    %169 = vector.shape_cast %160 : vector<8x16xf32> to vector<1x8x16xf32>
    tpu.vector_store %arg20[%c2_109, %c0_110, %c0_111], %169 {strides = array<i32>} : memref<4x8x16xf32, #tpu.memory_space<vmem>>, vector<1x8x16xf32>,
    %cst_112 = arith.constant dense<0.000000e+00> : vector<8x32xf32>
    %170 = tpu.matmul %160, %54, %cst_112 {dimension_numbers = #tpu.dot_dimension_numbers<[1], [0], [0], [1], [0, 0, 1, 1], [], []>} : vector<8x16xf32>, vector<16x32xf32>, vector<8x32xf32> -> vector<8x32xf32>
    %171 = vector.broadcast %55 : vector<1x32xf32> to vector<8x32xf32>
    %172 = arith.addf %170, %171 : vector<8x32xf32>
    %cst_113 = arith.constant 0.000000e+00 : f32
    %173 = vector.broadcast %cst_113 : f32 to vector<8x32xf32>
    %174 = arith.maximumf %172, %173 : vector<8x32xf32>
    %cst_114 = arith.constant dense<0.000000e+00> : vector<8x32xf32>
    %175 = tpu.matmul %174, %56, %cst_114 {dimension_numbers = #tpu.dot_dimension_numbers<[1], [0], [0], [1], [0, 0, 1, 1], [], []>} : vector<8x32xf32>, vector<32x32xf32>, vector<8x32xf32> -> vector<8x32xf32>
    %176 = vector.broadcast %57 : vector<1x32xf32> to vector<8x32xf32>
    %177 = arith.addf %175, %176 : vector<8x32xf32>
    %c2_115 = arith.constant 2 : index
    %c0_116 = arith.constant 0 : index
    %c0_117 = arith.constant 0 : index
    %178 = vector.load %arg25[%c2_115, %c0_116, %c0_117] : memref<4x8x32xf32, #tpu.memory_space<vmem>>, vector<1x8x32xf32>
    %179 = vector.shape_cast %178 : vector<1x8x32xf32> to vector<8x32xf32>
    %180 = vector.shape_cast %177 : vector<8x32xf32> to vector<1x8x32xf32>
    tpu.vector_store %arg25[%c2_115, %c0_116, %c0_117], %180 {strides = array<i32>} : memref<4x8x32xf32, #tpu.memory_space<vmem>>, vector<1x8x32xf32>,
    %181 = vector.extract_strided_slice %52 {offsets = [3, 0], sizes = [1, 16], strides = [1, 1]} : vector<4x16xf32> to vector<1x16xf32>
    %182 = vector.broadcast %181 : vector<1x16xf32> to vector<8x16xf32>
    %183 = arith.addf %21, %182 : vector<8x16xf32>
    %cst_118 = arith.constant -1.000000e+01 : f32
    %cst_119 = arith.constant 1.000000e+01 : f32
    %184 = vector.broadcast %cst_118 : f32 to vector<8x16xf32>
    %185 = arith.maximumf %184, %183 : vector<8x16xf32>
    %186 = vector.broadcast %cst_119 : f32 to vector<8x16xf32>
    %187 = arith.minimumf %186, %185 : vector<8x16xf32>
    %188 = vector.extract_strided_slice %53 {offsets = [3, 0], sizes = [1, 16], strides = [1, 1]} : vector<4x16xf32> to vector<1x16xf32>
    %189 = vector.broadcast %188 : vector<1x16xf32> to vector<8x16xf32>
    %190 = arith.addf %22, %189 : vector<8x16xf32>
    %cst_120 = arith.constant -5.000000e+00 : f32
    %cst_121 = arith.constant 5.000000e+00 : f32
    %191 = vector.broadcast %cst_120 : f32 to vector<8x16xf32>
    %192 = arith.maximumf %191, %190 : vector<8x16xf32>
    %193 = vector.broadcast %cst_121 : f32 to vector<8x16xf32>
    %194 = arith.minimumf %193, %192 : vector<8x16xf32>
    %cst_122 = arith.constant 5.000000e-01 : f32
    %195 = vector.broadcast %cst_122 : f32 to vector<8x16xf32>
    %196 = arith.mulf %195, %194 : vector<8x16xf32>
    %197 = math.exp %196 : vector<8x16xf32>
    %c3 = arith.constant 3 : index
    %c0_123 = arith.constant 0 : index
    %c0_124 = arith.constant 0 : index
    %198 = vector.load %arg1[%c3, %c0_123, %c0_124] : memref<4x8x16xf32, #tpu.memory_space<vmem>>, vector<1x8x16xf32>
    %199 = vector.shape_cast %198 : vector<1x8x16xf32> to vector<8x16xf32>
    %200 = arith.mulf %197, %199 : vector<8x16xf32>
    %201 = arith.addf %187, %200 : vector<8x16xf32>
    %c3_125 = arith.constant 3 : index
    %c0_126 = arith.constant 0 : index
    %c0_127 = arith.constant 0 : index
    %202 = vector.load %arg18[%c3_125, %c0_126, %c0_127] : memref<4x8x16xf32, #tpu.memory_space<vmem>>, vector<1x8x16xf32>
    %203 = vector.shape_cast %202 : vector<1x8x16xf32> to vector<8x16xf32>
    %204 = vector.shape_cast %187 : vector<8x16xf32> to vector<1x8x16xf32>
    tpu.vector_store %arg18[%c3_125, %c0_126, %c0_127], %204 {strides = array<i32>} : memref<4x8x16xf32, #tpu.memory_space<vmem>>, vector<1x8x16xf32>,
    %c3_128 = arith.constant 3 : index
    %c0_129 = arith.constant 0 : index
    %c0_130 = arith.constant 0 : index
    %205 = vector.load %arg19[%c3_128, %c0_129, %c0_130] : memref<4x8x16xf32, #tpu.memory_space<vmem>>, vector<1x8x16xf32>
    %206 = vector.shape_cast %205 : vector<1x8x16xf32> to vector<8x16xf32>
    %207 = vector.shape_cast %194 : vector<8x16xf32> to vector<1x8x16xf32>
    tpu.vector_store %arg19[%c3_128, %c0_129, %c0_130], %207 {strides = array<i32>} : memref<4x8x16xf32, #tpu.memory_space<vmem>>, vector<1x8x16xf32>,
    %c3_131 = arith.constant 3 : index
    %c0_132 = arith.constant 0 : index
    %c0_133 = arith.constant 0 : index
    %208 = vector.load %arg20[%c3_131, %c0_132, %c0_133] : memref<4x8x16xf32, #tpu.memory_space<vmem>>, vector<1x8x16xf32>
    %209 = vector.shape_cast %208 : vector<1x8x16xf32> to vector<8x16xf32>
    %210 = vector.shape_cast %201 : vector<8x16xf32> to vector<1x8x16xf32>
    tpu.vector_store %arg20[%c3_131, %c0_132, %c0_133], %210 {strides = array<i32>} : memref<4x8x16xf32, #tpu.memory_space<vmem>>, vector<1x8x16xf32>,
    %cst_134 = arith.constant dense<0.000000e+00> : vector<8x32xf32>
    %211 = tpu.matmul %201, %54, %cst_134 {dimension_numbers = #tpu.dot_dimension_numbers<[1], [0], [0], [1], [0, 0, 1, 1], [], []>} : vector<8x16xf32>, vector<16x32xf32>, vector<8x32xf32> -> vector<8x32xf32>
    %212 = vector.broadcast %55 : vector<1x32xf32> to vector<8x32xf32>
    %213 = arith.addf %211, %212 : vector<8x32xf32>
    %cst_135 = arith.constant 0.000000e+00 : f32
    %214 = vector.broadcast %cst_135 : f32 to vector<8x32xf32>
    %215 = arith.maximumf %213, %214 : vector<8x32xf32>
    %cst_136 = arith.constant dense<0.000000e+00> : vector<8x32xf32>
    %216 = tpu.matmul %215, %56, %cst_136 {dimension_numbers = #tpu.dot_dimension_numbers<[1], [0], [0], [1], [0, 0, 1, 1], [], []>} : vector<8x32xf32>, vector<32x32xf32>, vector<8x32xf32> -> vector<8x32xf32>
    %217 = vector.broadcast %57 : vector<1x32xf32> to vector<8x32xf32>
    %218 = arith.addf %216, %217 : vector<8x32xf32>
    %c3_137 = arith.constant 3 : index
    %c0_138 = arith.constant 0 : index
    %c0_139 = arith.constant 0 : index
    %219 = vector.load %arg25[%c3_137, %c0_138, %c0_139] : memref<4x8x32xf32, #tpu.memory_space<vmem>>, vector<1x8x32xf32>
    %220 = vector.shape_cast %219 : vector<1x8x32xf32> to vector<8x32xf32>
    %221 = vector.shape_cast %218 : vector<8x32xf32> to vector<1x8x32xf32>
    tpu.vector_store %arg25[%c3_137, %c0_138, %c0_139], %221 {strides = array<i32>} : memref<4x8x32xf32, #tpu.memory_space<vmem>>, vector<1x8x32xf32>,
    return
  }
}

</mosaic_0001>

<bundles_post_ra>
// kernel: _lambda_.1
= control target key start
LH: loop header
LB: loop body
LE: loop exit
PB: predicated region body
PF: predicated region fallthrough
CT: control target
= control target key end

     0   :  { %s1800_s0 = inlined_call_operand.vmem [shape: f32[8,32], index: 0, kind: input, shape index: {}]   ;;  %s1801_s1 = inlined_call_operand.hbm [shape: f32[4,8,16], index: 1, kind: input, shape index: {}]   ;;  %s1802_s2 = inlined_call_operand.hbm [shape: f32[32,32], index: 2, kind: input, shape index: {}]   ;;  %s1803_s3 = inlined_call_operand.vmem [shape: f32[1,32], index: 3, kind: input, shape index: {}]   ;;  %s1804_s4 = inlined_call_operand.hbm [shape: f32[32,32], index: 4, kind: input, shape index: {}]   ;;  %s1805_s5 = inlined_call_operand.vmem [shape: f32[1,32], index: 5, kind: input, shape index: {}]   ;;  %s1806_s6 = inlined_call_operand.hbm [shape: f32[32,36], index: 6, kind: input, shape index: {}]   ;;  %s1807_s7 = inlined_call_operand.vmem [shape: f32[1,36], index: 7, kind: input, shape index: {}]   ;;  %s1808_s8 = inlined_call_operand.vmem [shape: f32[4,16], index: 8, kind: input, shape index: {}]   ;;  %s1809_s9 = inlined_call_operand.hbm [shape: f32[4,16], index: 9, kind: input, shape index: {}]   ;;  %s1810_s10 = inlined_call_operand.hbm [shape: f32[4,16], index: 10, kind: input, shape index: {}]   ;;  %s1811_s11 = inlined_call_operand.hbm [shape: f32[1,16], index: 11, kind: input, shape index: {}]   ;;  %s1812_s12 = inlined_call_operand.hbm [shape: f32[4,16], index: 12, kind: input, shape index: {}]   ;;  %s1813_s13 = inlined_call_operand.hbm [shape: f32[1,16], index: 13, kind: input, shape index: {}]   ;;  %s1814_s14 = inlined_call_operand.hbm [shape: f32[16,32], index: 14, kind: input, shape index: {}]   ;;  %s1815_s15 = inlined_call_operand.hbm [shape: f32[1,32], index: 15, kind: input, shape index: {}]   ;;  %s1816_s16 = inlined_call_operand.hbm [shape: f32[32,32], index: 16, kind: input, shape index: {}]   ;;  %s1817_s17 = inlined_call_operand.hbm [shape: f32[1,32], index: 17, kind: input, shape index: {}]   ;;  %s1818_s18 = inlined_call_operand.hbm [shape: f32[4,8,16], index: 18, kind: output, shape index: {0}]   ;;  %s1819_s19 = inlined_call_operand.hbm [shape: f32[4,8,16], index: 19, kind: output, shape index: {1}]   ;;  %s1820_s20 = inlined_call_operand.hbm [shape: f32[4,8,16], index: 20, kind: output, shape index: {2}]   ;;  %s1821_s21 = inlined_call_operand.vmem [shape: f32[8,4], index: 21, kind: output, shape index: {3}]   ;;  %s1822_s22 = inlined_call_operand.vmem [shape: f32[8,4], index: 22, kind: output, shape index: {4}]   ;;  %s1823_s23 = inlined_call_operand.hbm [shape: f32[4,16], index: 23, kind: output, shape index: {5}]   ;;  %s1824_s24 = inlined_call_operand.hbm [shape: f32[4,16], index: 24, kind: output, shape index: {6}]   ;;  %s1825_s25 = inlined_call_operand.hbm [shape: f32[4,8,32], index: 25, kind: output, shape index: {7}]  }
   0x1   :  { %1826 = sst [smem:[#allocation43_spill]] %s1800_s0 }
   0x2   :  { %1827 = sst [smem:[#allocation44_spill]] %s1801_s1 }
   0x3   :  { %1828 = sst [smem:[#allocation45_spill]] %s1802_s2 }
   0x4   :  { %1829 = sst [smem:[#allocation46_spill]] %s1803_s3 }
   0x5   :  { %1830 = sst [smem:[#allocation47_spill]] %s1804_s4 }
   0x6   :  { %1831 = sst [smem:[#allocation48_spill]] %s1805_s5 }
   0x7   :  { %1832 = sst [smem:[#allocation49_spill]] %s1806_s6 }
   0x8   :  { %1833 = sst [smem:[#allocation50_spill]] %s1807_s7 }
   0x9   :  { %1834 = sst [smem:[#allocation51_spill]] %s1808_s8 }
   0xa   :  { %1835 = sst [smem:[#allocation52_spill]] %s1809_s9 }
   0xb   :  { %31 = vsyncpa [#allocation3], 0 }
   0xc   :  { %32 = vsyncpa [#allocation6], 0 }
   0xd   :  { %33 = vsyncpa [#allocation9], 0 }
   0xe   :  { %34 = vsyncpa [#allocation12], 0 }
   0xf   :  { %35 = vsyncpa [#allocation15], 0 }
  0x10   :  { %36 = vsyncpa [#allocation18], 0 }
  0x11   :  { %37 = vsyncpa [#allocation21], 0 }
  0x12   :  { %38 = vsyncpa [#allocation4], 0 }
  0x13   :  { %39 = vsyncpa [#allocation25], 0 }
  0x14   :  { %40 = vsyncpa [#allocation28], 0 }
  0x15   :  { %41 = vsyncpa [#allocation31], 0  ;;  %s1836_s6 = sld [smem:[#allocation45_spill]]  ;;  %s1463_s7 = smov [#allocation5]  }
  0x16   :  { %s63_s3 = sshll.u32 %s1463_s7, 4  ;;  %s1837_s8 = sld [smem:[#allocation49_spill]]  ;;  %s64_s3 = int_to_ptr.vmem [resolvable:$true] %s63_s3 }
  0x17   :  { %s1464_s4 = smov 128   ;;  %s1465_s28 = smov 8  }
  0x18   :  { %s1466_s9 = smov [#allocation8]   ;;  %s120_s2 = sshll.u32 %s1810_s10, 4  ;;  %s121_s2 = int_to_ptr.hbm [resolvable:$true] %s120_s2 }
  0x19   :  { %s93_s5 = sshll.u32 %s1466_s9, 4  ;;  %s142_s26 = sshll.u32 %s1812_s12, 4  ;;  %s94_s5 = int_to_ptr.vmem [resolvable:$true] %s93_s5  ;;  %s143_s26 = int_to_ptr.hbm [resolvable:$true] %s142_s26 }
  0x1a   :  { %s1467_s1 = smov [#allocation11]   ;;  %s163_s10 = sshll.u32 %s1814_s14, 4  ;;  %s164_s10 = int_to_ptr.hbm [resolvable:$true] %s163_s10 }
  0x1b   :  { %s61_s30 = sshll.u32 %s1836_s6, 4  ;;  %s1469_s6 = smov [#allocation17]   ;;  %s62_s30 = int_to_ptr.hbm [resolvable:$true] %s61_s30 }
  0x1c   :  { %s91_s27 = sshll.u32 %s1837_s8, 4  ;;  %s122_s8 = sshll.u32 %s1467_s1, 4  ;;  %s92_s27 = int_to_ptr.hbm [resolvable:$true] %s91_s27  ;;  %s123_s8 = int_to_ptr.vmem [resolvable:$true] %s122_s8 }
  0x1d   :  { %69 = dma.hbm_to_vmem [thread:$0]  %s62_s30, 512, %s64_s3, [#allocation6], %s1464_s4, %s1464_s4, %s1465_s28  }
  0x1e   :  { %99 = dma.hbm_to_vmem [thread:$0]  %s92_s27, 512, %s94_s5, [#allocation9], %s1464_s4, %s1464_s4, %s1465_s28  }
  0x1f   :  { %125 = dma.hbm_to_vmem [thread:$0]  %s121_s2, 64, %s123_s8, [#allocation12]  }
  0x20   :  { %s1468_s30 = smov [#allocation14]   ;;  %s187_s5 = sshll.u32 %s1816_s16, 4  ;;  %s188_s5 = int_to_ptr.hbm [resolvable:$true] %s187_s5 }
  0x21   :  { %s144_s3 = sshll.u32 %s1468_s30, 4  ;;  %s165_s12 = sshll.u32 %s1469_s6, 4  ;;  %s145_s3 = int_to_ptr.vmem [resolvable:$true] %s144_s3  ;;  %s166_s12 = int_to_ptr.vmem [resolvable:$true] %s165_s12 }
  0x22   :  { %147 = dma.hbm_to_vmem [thread:$0]  %s143_s26, 64, %s145_s3, [#allocation15]  }
  0x23   :  { %171 = dma.hbm_to_vmem [thread:$0]  %s164_s10, 256, %s166_s12, [#allocation18], %s1464_s4, %s1464_s4, %s1465_s28  }
  0x24   :  { %s1470_s2 = smov [#allocation20]   ;;  %s1838_s14 = sld [smem:[#allocation44_spill]] }
  0x25   :  { %s189_s7 = sshll.u32 %s1470_s2, 4  ;;  %s1839_s3 = sld [smem:[#allocation47_spill]]  ;;  %s190_s7 = int_to_ptr.vmem [resolvable:$true] %s189_s7 }
  0x26   :  { %195 = dma.hbm_to_vmem [thread:$0]  %s188_s5, 512, %s190_s7, [#allocation21], %s1464_s4, %s1464_s4, %s1465_s28  }
  0x27   :  { %s1471_s0 = smov [#allocation2]   ;;  %s1472_s10 = smov [#allocation7]  }
  0x28   :  { %s50_s29 = sshll.u32 %s1471_s0, 4  ;;  %s78_s27 = sshll.u32 %s1472_s10, 4  ;;  %s51_s29 = int_to_ptr.vmem [resolvable:$true] %s50_s29  ;;  %s79_s27 = int_to_ptr.vmem [resolvable:$true] %s78_s27 }
  0x29   :  { %s1840_s2 = sld [smem:[#allocation52_spill]]  ;;  %s131_s8 = sshll.u32 %s1811_s11, 4  ;;  %s132_s8 = int_to_ptr.hbm [resolvable:$true] %s131_s8 }
  0x2a   :  { %s48_s30 = sshll.u32 %s1838_s14, 4  ;;  %s1473_s14 = smov [#allocation10]   ;;  %s49_s30 = int_to_ptr.hbm [resolvable:$true] %s48_s30 }
  0x2b   :  { %s76_s9 = sshll.u32 %s1839_s3, 4  ;;  %s111_s16 = sshll.u32 %s1473_s14, 4  ;;  %s77_s9 = int_to_ptr.hbm [resolvable:$true] %s76_s9  ;;  %s112_s16 = int_to_ptr.vmem [resolvable:$true] %s111_s16 }
  0x2c   :  { %56 = dma.hbm_to_vmem [thread:$0]  %s49_s30, 512, %s51_s29, [#allocation3], %s1464_s4, %s1464_s4, %s1465_s28  }
  0x2d   :  { %84 = dma.hbm_to_vmem [thread:$0]  %s77_s9, 512, %s79_s27, [#allocation6], %s1464_s4, %s1464_s4, %s1465_s28  }
  0x2e   :  { %s1474_s30 = smov [#allocation13]   ;;  %s153_s29 = sshll.u32 %s1813_s13, 4  ;;  %s154_s29 = int_to_ptr.hbm [resolvable:$true] %s153_s29 }
  0x2f   :  { %s109_s1 = sshll.u32 %s1840_s2, 4  ;;  %s133_s26 = sshll.u32 %s1474_s30, 4  ;;  %s110_s1 = int_to_ptr.hbm [resolvable:$true] %s109_s1  ;;  %s134_s26 = int_to_ptr.vmem [resolvable:$true] %s133_s26 }
  0x30   :  { %114 = dma.hbm_to_vmem [thread:$0]  %s110_s1, 64, %s112_s16, [#allocation9]  }
  0x31   :  { %136 = dma.hbm_to_vmem [thread:$0]  %s132_s8, 16, %s134_s26, [#allocation12]  }
  0x32   :  { %s177_s27 = sshll.u32 %s1815_s15, 4  ;;  %s1475_s6 = smov [#allocation16]   ;;  %s178_s27 = int_to_ptr.hbm [resolvable:$true] %s177_s27 }
  0x33   :  { %s155_s11 = sshll.u32 %s1475_s6, 4  ;;  %s1476_s12 = smov [#allocation19]   ;;  %s156_s11 = int_to_ptr.vmem [resolvable:$true] %s155_s11 }
  0x34   :  { %158 = dma.hbm_to_vmem [thread:$0]  %s154_s29, 16, %s156_s11, [#allocation15]  }
  0x35   :  { %s179_s2 = sshll.u32 %s1476_s12, 4  ;;  %s201_s7 = sshll.u32 %s1817_s17, 4  ;;  %s180_s2 = int_to_ptr.vmem [resolvable:$true] %s179_s2  ;;  %s202_s7 = int_to_ptr.hbm [resolvable:$true] %s201_s7 }
  0x36   :  { %182 = dma.hbm_to_vmem [thread:$0]  %s178_s27, 16, %s180_s2, [#allocation18]  }
  0x37   :  { %s1477_s13 = smov [#allocation22]  }
  0x38   :  { %s203_s8 = sshll.u32 %s1477_s13, 4  ;;  %s204_s8 = int_to_ptr.vmem [resolvable:$true] %s203_s8 }
  0x39   :  { %206 = dma.hbm_to_vmem [thread:$0]  %s202_s7, 16, %s204_s8, [#allocation21]  }
  0x3a   :  { %1441 = dma.done.wait [#allocation3], 512  }
  0x3b   :  { %1442 = vsyncadd [#allocation3], 4294966784 }
  0x3c   :  { %1443 = dma.done.wait [#allocation6], 1024  }
  0x3d   :  { %1444 = vsyncadd [#allocation6], 4294966272 }
  0x3e   :  { %1445 = dma.done.wait [#allocation9], 576  }
  0x3f   :  { %1446 = vsyncadd [#allocation9], 4294966720 }
  0x40   :  { %1447 = dma.done.wait [#allocation12], 80  }
  0x41   :  { %1448 = vsyncadd [#allocation12], 4294967216 }
  0x42   :  { %1449 = dma.done.wait [#allocation15], 80  }
  0x43   :  { %1450 = vsyncadd [#allocation15], 4294967216 }
  0x44   :  { %1451 = dma.done.wait [#allocation18], 272  }
  0x45   :  { %1452 = vsyncadd [#allocation18], 4294967024 }
  0x46   :  { %1453 = dma.done.wait [#allocation21], 528  }
  0x47   :  { %1454 = vsyncadd [#allocation21], 4294966768  ;;  %v263_v0 = vld [vmem:[#allocation5 + $0x18] sm:$0xff]  ;;  %v262_v1 = vld [vmem:[#allocation5 + $0x10] sm:$0xff]  ;;  %s1841_s14 = sld [smem:[#allocation43_spill]]  ;;  %vm268_vm0 = vcmask 261120  }
  0x48   :  { %284 = vmatpush.msra.mxu0 %v263_v0  ;;  %v296_v2 = vld [vmem:[#allocation7 + $0x18] sm:$0xff]  ;;  %v261_v3 = vld [vmem:[#allocation5 + $0x8] sm:$0xff]  ;;  %v260_v4 = vld [vmem:[#allocation5] sm:$0xff]  ;;  %s1478_s16 = smov 20   ;;  %s1842_s3 = sld [smem:[#allocation46_spill]]  ;;  %vm356_vm1 = vcmask 31744  }
  0x49   :  { %316 = vmatpush.msra.mxu1 %v296_v2  ;;  %v295_v6 = vld [vmem:[#allocation7 + $0x10] sm:$0xff]  ;;  %v294_v7 = vld [vmem:[#allocation7 + $0x8] sm:$0xff]  ;;  %v293_v8 = vld [vmem:[#allocation7] sm:$0xff]  ;;  %s1843_s10 = sld [smem:[#allocation51_spill]]  ;;  %s1479_s9 = smov 4   ;;  %vm446_vm2 = vcmask 130048  }
  0x4a   :  { %285 = vmatpush.msra.mxu0 %v262_v1  ;;  %v328_v9 = vld [vmem:[#allocation8 + $0x18] sm:$0xff]  ;;  %v403_v10 = vld [vmem:[#allocation10] sm:$0xf]  ;;  %v327_v16 = vld [vmem:[#allocation8 + $0x10] sm:$0xff]  ;;  %s1844_s11 = sld [smem:[#allocation48_spill]]  ;;  %s1481_s13 = smov 124  }
  0x4b   :  { %317 = vmatpush.msra.mxu1 %v295_v6  ;;  %348 = vmatpush.msra.mxu2 %v328_v9  ;;  %v519_v11 = vperm.slane %v403_v10, 1  ;;  %v326_v17 = vld [vmem:[#allocation8 + $0x8] sm:$0xff]  ;;  %v325_v18 = vld [vmem:[#allocation8] sm:$0xff]  ;;  %v713_v20 = vperm.slane %v403_v10, 3  ;;  %v420_v21 = vperm.slane %v403_v10, 0  ;;  %v725_v22 = vld [vmem:[#allocation2 + $0x18] sm:$0xff] }
  0x4c   :  { %286 = vmatpush.msra.mxu0 %v261_v3  ;;  %v431_v19 = vld [vmem:[#allocation2] sm:$0xff]  ;;  %v616_v23 = vperm.slane %v403_v10, 2  ;;  %v628_v24 = vld [vmem:[#allocation2 + $0x10] sm:$0xff]  ;;  %v531_v28 = vld [vmem:[#allocation2 + $0x8] sm:$0xff]  ;;  %s1845_s1 = sld [smem:[#allocation50_spill]]  ;;  %s1482_s8 = smov 108  }
  0x4d   :  { %v259_v5 = vld [vmem:[%s1841_s14] sm:$0xff]  ;;  %318 = vmatpush.msra.mxu1 %v294_v7  ;;  %521 = vrot.lane.b32.xlu1 %v519_v11, %s1478_s16  ;;  %s1483_s15 = smov [#allocation24]   ;;  %s821_s30 = sshll.u32 %s1819_s19, 4  ;;  %vm391_vm7 = vcmask 125952   ;;  %s822_s30 = int_to_ptr.hbm [resolvable:$true] %s821_s30 }
  0x4e   :  { %287 = vmatpush.msra.mxu0 %v260_v4  ;;  %v966_v12 = vld [vmem:[%s1842_s3] ss:$0 sm:$0xff]  ;;  %349 = vmatpush.msra.mxu2 %v327_v16  ;;  %s819_s17 = sshll.u32 %s1483_s15, 4  ;;  %s1484_s26 = smov [#allocation26]   ;;  %s820_s17 = int_to_ptr.vmem [resolvable:$true] %s819_s17 }
  0x4f   :  { %919 = vmatmul.msk.f32.vlgmr.msra.gmra.mxu0 %vm268_vm0, %v259_v5  ;;  %319 = vmatpush.msra.mxu1 %v293_v8  ;;  %v402_v25 = vld [vmem:[%s1843_s10] sm:$0xf]  ;;  %s832_s3 = sshll.u32 %s1484_s26, 4  ;;  %s834_s10 = sshll.u32 %s1820_s20, 4  ;;  %s833_s3 = int_to_ptr.vmem [resolvable:$true] %s832_s3  ;;  %s835_s10 = int_to_ptr.hbm [resolvable:$true] %s834_s10 }
  0x50   :  { %350 = vmatpush.msra.mxu2 %v326_v17  ;;  %715 = vrot.lane.b32.xlu2 %v713_v20, %s1478_s16  ;;  %v608_v26 = vperm.slane %v402_v25, 2  ;;  %v412_v27 = vperm.slane %v402_v25, 0  ;;  %v511_v29 = vperm.slane %v402_v25, 1  ;;  %v967_v30 = vld [vmem:[%s1844_s11] ss:$0 sm:$0xff]  ;;  %v705_v34 = vperm.slane %v402_v25, 3 }
  0x51   :  { %422 = vrot.lane.b32.xlu0 %v420_v21, %s1478_s16  ;;  %s1485_s19 = smov [#allocation23]   ;;  %s808_s6 = sshll.u32 %s1818_s18, 4  ;;  %s809_s6 = int_to_ptr.hbm [resolvable:$true] %s808_s6 }
  0x52   :  { %351 = vmatpush.msra.mxu2 %v325_v18  ;;  %v968_v36 = vld [vmem:[%s1845_s1] ss:$0 sm:$0xff]  ;;  %s806_s20 = sshll.u32 %s1485_s19, 4  ;;  %s1486_s18 = smov [#allocation27]   ;;  %s807_s20 = int_to_ptr.vmem [resolvable:$true] %s806_s20 }
  0x53   :  { %s850_s2 = sshll.u32 %s1486_s18, 4  ;;  %s852_s7 = sshll.u32 %s1823_s23, 4  ;;  %s851_s2 = int_to_ptr.vmem [resolvable:$true] %s850_s2  ;;  %s853_s7 = int_to_ptr.hbm [resolvable:$true] %s852_s7 }
  0x54   :  { %s863_s15 = sshll.u32 %s1824_s24, 4  ;;  %s1488_s23 = smov [#allocation30]   ;;  %s864_s15 = int_to_ptr.hbm [resolvable:$true] %s863_s15 }
  0x55   :  { %433 = vrot.lane.b32.xlu1 %v431_v19, %s1478_s16  ;;  %s871_s24 = sshll.u32 %s1488_s23, 4  ;;  %s872_s24 = int_to_ptr.vmem [resolvable:$true] %s871_s24 }
  0x58   :  { %630 = vrot.lane.b32.xlu2 %v628_v24, %s1478_s16 }
  0x59   :  { %618 = vrot.lane.b32.xlu0 %v616_v23, %s1478_s16 }
  0x5d   :  { %727 = vrot.lane.b32.xlu1 %v725_v22, %s1478_s16 }
  0x60   :  { %414 = vrot.lane.b32.xlu2 %v412_v27, %s1479_s9  ;;  %v404_v27 = vld [vmem:[#allocation17] sm:$0xff] }
  0x61   :  { %533 = vrot.lane.b32.xlu0 %v531_v28, %s1478_s16  ;;  %s873_s16 = sshll.u32 %s1825_s25, 4  ;;  %s874_s16 = int_to_ptr.hbm [resolvable:$true] %s873_s16 }
  0x65   :  { %610 = vrot.lane.b32.xlu1 %v608_v26, %s1479_s9  ;;  %v405_v26 = vld [vmem:[#allocation17 + $0x8] sm:$0xff] }
  0x66   :  { %673 = vmatpush.msrb.mxu2 %v405_v26  ;;  %477 = vmatpush.msra.mxu3 %v405_v26 }
  0x67   :  { %576 = vmatpush.msrb.mxu0 %v405_v26 }
  0x68   :  { %513 = vrot.lane.b32.xlu2 %v511_v29, %s1479_s9  ;;  %674 = vmatpush.msrb.mxu2 %v404_v27 }
  0x69   :  { %478 = vmatpush.msra.mxu3 %v404_v27  ;;  %577 = vmatpush.msrb.mxu0 %v404_v27 }
  0x6b   :  { %770 = vmatpush.msra.mxu0 %v405_v26 }
  0x6d   :  { %771 = vmatpush.msra.mxu0 %v404_v27 }
  0x70   :  { %707 = vrot.lane.b32.xlu2 %v705_v34, %s1479_s9 }
  0xaa   :  { %v716_v50 = vpop.permute.xlu2 %715 }
  0xb2   :  { %v631_v1 = vpop.permute.xlu2 %630 }
  0xba   :  { %v415_v6 = vpop.permute.xlu2 %414 }
  0xbf   :  { %v522_v40 = vpop.permute.xlu1 %521 }
  0xc2   :  { %v514_v8 = vpop.permute.xlu2 %513 }
  0xc3   :  { %v423_v35 = vpop.permute.xlu0 %422 }
  0xc7   :  { %v434_v59 = vpop.permute.xlu1 %433 }
  0xca   :  { %v708_v19 = vpop.permute.xlu2 %707 }
  0xcb   :  { %v619_v38 = vpop.permute.xlu0 %618 }
  0xcc   :  { %v289_v13 = vpop.f32.mrf.mxu0 }
  0xcd   :  { %v290_v14 = vadd.f32 %v966_v12, %v289_v13 }
  0xcf   :  { %v292_v15 = vmax.f32 %v290_v14, 0.0  ;;  %v728_v4 = vpop.permute.xlu1 %727 }
  0xd1   :  { %920 = vmatmul.msk.f32.vlgmr.msra.gmra.mxu1 %vm268_vm0, %v292_v15 }
  0xd3   :  { %v534_v56 = vpop.permute.xlu0 %533 }
  0xd7   :  { %v611_v7 = vpop.permute.xlu1 %610 }
 0x14e   :  { %v321_v31 = vpop.f32.mrf.mxu1 }
 0x14f   :  { %v322_v32 = vadd.f32 %v967_v30, %v321_v31 }
 0x151   :  { %v324_v33 = vmax.f32 %v322_v32, 0.0 }
 0x153   :  { %921 = vmatmul.msk.f32.vlgmr.msra.gmra.mxu2 %vm268_vm0, %v324_v33 }
 0x1d6   :  { %v353_v37 = vpop.f32.mrf.mxu2 }
 0x1d7   :  { %v1702_v39 = vadd.f32 %v968_v36, %v353_v37 }
 0x1d9   :  { %v1705_v41 = vadd.f32 %v619_v38, %v1702_v39  ;;  %v1708_v42 = vadd.f32 %v522_v40, %v1702_v39  ;;  %357 = vst.msk [vmem:[%s1821_s21] sm:$0xff] %vm356_vm1, %v1702_v39  ;;  %v425_v43 = vadd.f32 %v423_v35, %v1702_v39  ;;  %v1719_v53 = vadd.f32 %v716_v50, %v1702_v39  ;;  %s1480_s21 = smov 112  }
 0x1da   :  { %v516_v9 = vadd.f32 %v514_v8, %v1702_v39  ;;  %v417_v10 = vadd.f32 %v415_v6, %v1702_v39  ;;  %v613_v17 = vadd.f32 %v611_v7, %v1702_v39  ;;  %v710_v22 = vadd.f32 %v708_v19, %v1702_v39  ;;  %v970_v19 = vld [vmem:[#allocation22] ss:$0 sm:$0xff] }
 0x1db   :  { %v929_v44 = vclamps-f32 %v1708_v42, 5.0  ;;  %v925_v45 = vclamps-f32 %v425_v43, 5.0  ;;  %v933_v46 = vclamps-f32 %v1705_v41, 5.0  ;;  %v937_v55 = vclamps-f32 %v1719_v53, 5.0 }
 0x1dc   :  { %v928_v11 = vclamps-f32 %v516_v9, 10.0  ;;  %v924_v13 = vclamps-f32 %v417_v10, 10.0  ;;  %v932_v18 = vclamps-f32 %v613_v17, 10.0  ;;  %v936_v23 = vclamps-f32 %v710_v22, 10.0 }
 0x1dd   :  { %v527_v47 = vmul.f32 0.5, %v929_v44  ;;  %v428_v48 = vmul.f32 0.5, %v925_v45  ;;  %v624_v52 = vmul.f32 0.5, %v933_v46  ;;  %v721_v61 = vmul.f32 0.5, %v937_v55 }
 0x1de   :  { %v358_v28 = vsel %vm356_vm1, %v1702_v39, -inf }
 0x1df   :  { %v528_v49 = vmul.f32 1.442695, %v527_v47  ;;  %v429_v51 = vmul.f32 1.442695, %v428_v48  ;;  %v625_v54 = vmul.f32 1.442695, %v624_v52 }
 0x1e0   :  { %v722_v63 = vmul.f32 1.442695, %v721_v61  ;;  %v408_v47 = vld [vmem:[#allocation20 + $0x8] sm:$0xff]  ;;  %v407_v48 = vld [vmem:[#allocation20] sm:$0xff] }
 0x1e1   :  { %973 = vpow2.f32 %v528_v49  ;;  %v969_v49 = vld [vmem:[#allocation19] ss:$0 sm:$0xff] }
 0x1e2   :  { %975 = vpow2.f32 %v429_v51 }
 0x1e3   :  { %977 = vpow2.f32 %v625_v54 }
 0x1e4   :  { %979 = vpow2.f32 %v722_v63 }
 0x1e7   :  { %v974_v57 = vpop.eup %973 }
 0x1e8   :  { %v976_v58 = vpop.eup %975  ;;  %v536_v60 = vmul.f32 %v974_v57, %v534_v56 }
 0x1e9   :  { %v436_v62 = vmul.f32 %v976_v58, %v434_v59  ;;  %v978_v0 = vpop.eup %977 }
 0x1ea   :  { %538 = vrot.lane.b32.xlu1 %v536_v60, %s1480_s21  ;;  %v633_v2 = vmul.f32 %v978_v0, %v631_v1  ;;  %v980_v3 = vpop.eup %979 }
 0x1eb   :  { %438 = vrot.lane.b32.xlu0 %v436_v62, %s1480_s21  ;;  %v730_v5 = vmul.f32 %v980_v3, %v728_v4 }
 0x1f3   :  { %635 = vrot.lane.b32.xlu0 %v633_v2, %s1480_s21 }
 0x1fb   :  { %732 = vrot.lane.b32.xlu0 %v730_v5, %s1480_s21  ;;  %s1487_s21 = smov [#allocation29]  }
 0x25c   :  { %v539_v12 = vpop.permute.xlu1 %538 }
 0x25d   :  { %v541_v14 = vadd.f32 %v928_v11, %v539_v12  ;;  %v439_v15 = vpop.permute.xlu0 %438  ;;  %v383_v12 = vld [vmem:[#allocation11] sm:$0xf] }
 0x25e   :  { %v441_v16 = vadd.f32 %v924_v13, %v439_v15  ;;  %v393_v15 = vld [vmem:[#allocation14] sm:$0xf] }
 0x25f   :  { %555 = vrot.lane.b32.xlu0 %v541_v14, %s1481_s13 }
 0x260   :  { %454 = vrot.lane.b32.xlu1 %v441_v16, %s1481_s13 }
 0x265   :  { %v636_v20 = vpop.permute.xlu0 %635 }
 0x266   :  { %v638_v21 = vadd.f32 %v932_v18, %v636_v20 }
 0x268   :  { %652 = vrot.lane.b32.xlu2 %v638_v21, %s1481_s13 }
 0x26d   :  { %v733_v24 = vpop.permute.xlu0 %732 }
 0x26e   :  { %v735_v25 = vadd.f32 %v936_v23, %v733_v24 }
 0x270   :  { %749 = vrot.lane.b32.xlu1 %v735_v25, %s1481_s13 }
 0x278   :  { %449 = vrot.lane.b32.xlu1 %v925_v45, %s1482_s8 }
 0x280   :  { %549 = vrot.lane.b32.xlu1 %v929_v44, %s1482_s8 }
 0x288   :  { %646 = vrot.lane.b32.xlu1 %v933_v46, %s1482_s8  ;;  %v409_v46 = vld [vmem:[#allocation20 + $0x10] sm:$0xff] }
 0x290   :  { %743 = vrot.lane.b32.xlu1 %v937_v55, %s1482_s8 }
 0x291   :  { %359 = vmax.xlane.f32.xlu2 %v358_v28 }
 0x298   :  { %443 = vrot.lane.b32.xlu1 %v924_v13, %s1481_s13  ;;  %v972_v13 = vld [vmem:[#allocation16] ss:$0 sm:$0xff] }
 0x299   :  { %v398_v16 = vadd.f32 %v972_v13, %v393_v15 }
 0x2a0   :  { %640 = vrot.lane.b32.xlu1 %v932_v18, %s1481_s13  ;;  %v923_v18 = vclamps-f32 %v398_v16, 5.0 }
 0x2a2   :  { %401 = vst.msk [vmem:[#allocation29] sm:$0xf] %vm391_vm7, %v923_v18 }
 0x2a9   :  { %543 = vrot.lane.b32.xlu2 %v928_v11, %s1481_s13  ;;  %v971_v11 = vld [vmem:[#allocation13] ss:$0 sm:$0xff] }
 0x2aa   :  { %v388_v14 = vadd.f32 %v971_v11, %v383_v12 }
 0x2ac   :  { %v922_v17 = vclamps-f32 %v388_v14, 10.0 }
 0x2ae   :  { %392 = vst.msk [vmem:[#allocation27] sm:$0xf] %vm391_vm7, %v922_v17 }
 0x2af   :  { %855 = dma.vmem_to_hbm [thread:$0]  %s851_s2, 64, %s853_s7, [#allocation28]  }
 0x2c2   :  { %v653_v29 = vpop.permute.xlu2 %652 }
 0x2c3   :  { %656 = vst.msk [vmem:[#allocation26 + $0x10] sm:$0xff] %vm446_vm2, %v653_v29  ;;  %934 = vmatmul.msk.f32.vlgmr.msrb.gmra.mxu2 %vm446_vm2, %v653_v29 }
 0x2d1   :  { %v556_v30 = vpop.permute.xlu0 %555 }
 0x2d2   :  { %559 = vst.msk [vmem:[#allocation26 + $0x8] sm:$0xff] %vm446_vm2, %v556_v30  ;;  %v455_v31 = vpop.permute.xlu1 %454  ;;  %930 = vmatmul.msk.f32.vlgmr.msrb.gmra.mxu0 %vm446_vm2, %v556_v30 }
 0x2d3   :  { %457 = vst.msk [vmem:[#allocation26] sm:$0xff] %vm446_vm2, %v455_v31  ;;  %926 = vmatmul.msk.f32.vlgmr.msra.gmra.mxu3 %vm446_vm2, %v455_v31 }
 0x2e2   :  { %v750_v32 = vpop.permute.xlu1 %749 }
 0x2e3   :  { %753 = vst.msk [vmem:[#allocation26 + $0x18] sm:$0xff] %vm446_vm2, %v750_v32  ;;  %938 = vmatmul.msk.f32.vlgmr.msra.gmra.mxu0 %vm446_vm2, %v750_v32 }
 0x2ea   :  { %v450_v33 = vpop.permute.xlu1 %449 }
 0x2eb   :  { %452 = vst.msk [vmem:[#allocation24] sm:$0xff] %vm446_vm2, %v450_v33 }
 0x2f2   :  { %v550_v34 = vpop.permute.xlu1 %549 }
 0x2f3   :  { %553 = vst.msk [vmem:[#allocation24 + $0x8] sm:$0xff] %vm446_vm2, %v550_v34 }
 0x2fa   :  { %v647_v35 = vpop.permute.xlu1 %646 }
 0x2fb   :  { %650 = vst.msk [vmem:[#allocation24 + $0x10] sm:$0xff] %vm446_vm2, %v647_v35 }
 0x302   :  { %v744_v36 = vpop.permute.xlu1 %743 }
 0x303   :  { %747 = vst.msk [vmem:[#allocation24 + $0x18] sm:$0xff] %vm446_vm2, %v744_v36 }
 0x304   :  { %v360_v37 = vpop.xlane.xlu2 %359  ;;  %827 = dma.vmem_to_hbm [thread:$0]  %s820_s17, 512, %s822_s30, [#allocation25], %s1464_s4, %s1464_s4, %s1465_s28  }
 0x305   :  { %v361_v38 = vsub.f32 %v1702_v39, %v360_v37  ;;  %v410_v39 = vld [vmem:[#allocation20 + $0x18] sm:$0xff]  ;;  %840 = dma.vmem_to_hbm [thread:$0]  %s833_s3, 512, %s835_s10, [#allocation25], %s1464_s4, %s1464_s4, %s1465_s28  }
 0x306   :  { %598 = vmatpush.msrb.mxu1 %v410_v39  ;;  %502 = vmatpush.msrb.mxu3 %v410_v39 }
 0x307   :  { %v362_v40 = vmul.f32 1.442695, %v361_v38 }
 0x308   :  { %599 = vmatpush.msrb.mxu1 %v409_v46  ;;  %503 = vmatpush.msrb.mxu3 %v409_v46 }
 0x309   :  { %981 = vpow2.f32 %v362_v40 }
 0x30a   :  { %v444_v41 = vpop.permute.xlu1 %443  ;;  %600 = vmatpush.msrb.mxu1 %v408_v47  ;;  %504 = vmatpush.msrb.mxu3 %v408_v47 }
 0x30b   :  { %447 = vst.msk [vmem:[#allocation23] sm:$0xff] %vm446_vm2, %v444_v41 }
 0x30c   :  { %v544_v42 = vpop.permute.xlu2 %543  ;;  %601 = vmatpush.msrb.mxu1 %v407_v48  ;;  %505 = vmatpush.msrb.mxu3 %v407_v48 }
 0x30d   :  { %547 = vst.msk [vmem:[#allocation23 + $0x8] sm:$0xff] %vm446_vm2, %v544_v42 }
 0x30e   :  { %695 = vmatpush.msra.mxu3 %v410_v39  ;;  %792 = vmatpush.msra.mxu1 %v410_v39 }
 0x30f   :  { %v1750_v43 = vpop.eup %981 }
 0x310   :  { %v364_v44 = vsel %vm356_vm1, %v1750_v43, 0.0  ;;  %696 = vmatpush.msra.mxu3 %v409_v46  ;;  %793 = vmatpush.msra.mxu1 %v409_v46 }
 0x311   :  { %365 = vadd.xlane.f32.xlu0 %v364_v44 }
 0x312   :  { %v641_v45 = vpop.permute.xlu1 %640  ;;  %697 = vmatpush.msra.mxu3 %v408_v47  ;;  %794 = vmatpush.msra.mxu1 %v408_v47 }
 0x313   :  { %644 = vst.msk [vmem:[#allocation23 + $0x10] sm:$0xff] %vm446_vm2, %v641_v45 }
 0x314   :  { %698 = vmatpush.msra.mxu3 %v407_v48  ;;  %795 = vmatpush.msra.mxu1 %v407_v48 }
 0x325   :  { %737 = vrot.lane.b32.xlu0 %v936_v23, %s1481_s13  ;;  %s861_s13 = sshll.u32 %s1487_s21, 4  ;;  %s862_s13 = int_to_ptr.vmem [resolvable:$true] %s861_s13 }
 0x326   :  { %866 = dma.vmem_to_hbm [thread:$0]  %s862_s13, 64, %s864_s15, [#allocation28]  }
 0x346   :  { %v676_v56 = vpop.f32.mrf.mxu2 }
 0x347   :  { %v677_v57 = vadd.f32 %v969_v49, %v676_v56 }
 0x349   :  { %v679_v59 = vmax.f32 %v677_v57, 0.0 }
 0x34f   :  { %v579_v50 = vpop.f32.mrf.mxu0 }
 0x350   :  { %v580_v51 = vadd.f32 %v969_v49, %v579_v50 }
 0x352   :  { %v582_v52 = vmax.f32 %v580_v51, 0.0 }
 0x354   :  { %931 = vmatmul.msk.f32.vlgmr.msrb.gmra.mxu1 %vm268_vm0, %v582_v52 }
 0x356   :  { %v480_v53 = vpop.f32.mrf.mxu3 }
 0x357   :  { %v481_v54 = vadd.f32 %v969_v49, %v480_v53 }
 0x359   :  { %v483_v55 = vmax.f32 %v481_v54, 0.0 }
 0x35b   :  { %927 = vmatmul.msk.f32.vlgmr.msrb.gmra.mxu3 %vm268_vm0, %v483_v55 }
 0x360   :  { %v773_v58 = vpop.f32.mrf.mxu0 }
 0x361   :  { %v774_v60 = vadd.f32 %v969_v49, %v773_v58 }
 0x363   :  { %v776_v61 = vmax.f32 %v774_v60, 0.0  ;;  %935 = vmatmul.msk.f32.vlgmr.msra.gmra.mxu3 %vm268_vm0, %v679_v59 }
 0x365   :  { %939 = vmatmul.msk.f32.vlgmr.msra.gmra.mxu1 %vm268_vm0, %v776_v61 }
 0x384   :  { %v366_v62 = vpop.xlane.xlu0 %365 }
 0x385   :  { %983 = vrcp.f32 %v366_v62  ;;  %v378_v2 = vand.u32 2147483648, %v366_v62  ;;  %v376_v4 = vand.u32 2147483647, %v366_v62  ;;  %vm372_vm4 = vweird.f32 %v366_v62 }
 0x387   :  { %v379_v6 = vor.u32 1.1754944e-38, %v378_v2  ;;  %vm377_vm6 = vcmp.eq.f32.partialorder %v376_v4, 8.507059e+37 }
 0x38b   :  { %v984_v63 = vpop.eup %983 }
 0x38c   :  { %v368_v0 = vmul.f32 %v984_v63, %v366_v62  ;;  %vm373_vm3 = vweird.f32 %v984_v63 }
 0x38d   :  { %vm374_vm5 = vmor %vm372_vm4, %vm373_vm3 }
 0x38e   :  { %v369_v1 = vsub.f32 1.0, %v368_v0 }
 0x390   :  { %v370_v3 = vmul.f32 %v984_v63, %v369_v1 }
 0x392   :  { %v371_v5 = vadd.f32 %v984_v63, %v370_v3 }
 0x394   :  { %v375_v7 = vsel %vm374_vm5, %v984_v63, %v371_v5 }
 0x395   :  { %v380_v8 = vsel %vm377_vm6, %v379_v6, %v375_v7 }
 0x396   :  { %v381_v9 = vmul.f32 %v1750_v43, %v380_v8 }
 0x397   :  { %v738_v10 = vpop.permute.xlu0 %737 }
 0x398   :  { %382 = vst.msk [vmem:[%s1822_s22] sm:$0xff] %vm356_vm1, %v381_v9 }
 0x399   :  { %741 = vst.msk [vmem:[#allocation23 + $0x18] sm:$0xff] %vm446_vm2, %v738_v10 }
 0x39a   :  { %814 = dma.vmem_to_hbm [thread:$0]  %s807_s20, 512, %s809_s6, [#allocation4], %s1464_s4, %s1464_s4, %s1465_s28  }
 0x3d1   :  { %v603_v20 = vpop.f32.mrf.mxu1 }
 0x3d2   :  { %v604_v21 = vadd.f32 %v970_v19, %v603_v20 }
 0x3d4   :  { %607 = vst.msk [vmem:[#allocation30 + $0x8] sm:$0xff] %vm268_vm0, %v604_v21 }
 0x3de   :  { %v507_v22 = vpop.f32.mrf.mxu3 }
 0x3df   :  { %v508_v23 = vadd.f32 %v970_v19, %v507_v22 }
 0x3e1   :  { %510 = vst.msk [vmem:[#allocation30] sm:$0xff] %vm268_vm0, %v508_v23 }
 0x3e2   :  { %v797_v24 = vpop.f32.mrf.mxu1 }
 0x3e3   :  { %v798_v25 = vadd.f32 %v970_v19, %v797_v24 }
 0x3e5   :  { %801 = vst.msk [vmem:[#allocation30 + $0x18] sm:$0xff] %vm268_vm0, %v798_v25 }
 0x3e6   :  { %v700_v26 = vpop.f32.mrf.mxu3 }
 0x3e7   :  { %v701_v27 = vadd.f32 %v970_v19, %v700_v26 }
 0x3e9   :  { %704 = vst.msk [vmem:[#allocation30 + $0x10] sm:$0xff] %vm268_vm0, %v701_v27 }
 0x3ea   :  { %879 = dma.vmem_to_hbm [thread:$0]  %s872_s24, 512, %s874_s16, [#allocation31], %s1464_s4, %s1464_s4, %s1465_s28  }
 0x3eb   :  { %1455 = dma.done.wait [#allocation4], 512  }
 0x3ec   :  { %1456 = vsyncadd [#allocation4], 4294966784 }
 0x3ed   :  { %1457 = dma.done.wait [#allocation25], 1024  }
 0x3ee   :  { %1458 = vsyncadd [#allocation25], 4294966272 }
 0x3ef   :  { %1459 = dma.done.wait [#allocation28], 128  }
 0x3f0   :  { %1460 = vsyncadd [#allocation28], 4294967168 }
 0x3f1   :  { %1461 = dma.done.wait [#allocation31], 512  }
 0x3f2   :  { %1462 = vsyncadd [#allocation31], 4294966784 }
 0x3f3   :  { %908 = vsyncpa [#allocation3], 1 }
 0x3f4   :  { %909 = vsyncpa [#allocation6], 1 }
 0x3f5   :  { %910 = vsyncpa [#allocation9], 1 }
 0x3f6   :  { %911 = vsyncpa [#allocation12], 1 }
 0x3f7   :  { %912 = vsyncpa [#allocation15], 1 }
 0x3f8   :  { %913 = vsyncpa [#allocation18], 1 }
 0x3f9   :  { %914 = vsyncpa [#allocation21], 1 }
 0x3fa   :  { %915 = vsyncpa [#allocation4], 1 }
 0x3fb   :  { %916 = vsyncpa [#allocation25], 1 }
 0x3fc   :  { %917 = vsyncpa [#allocation28], 1 }
 0x3fd   :  { %918 = vsyncpa [#allocation31], 1 }

</bundles_post_ra>
